<compile_context>
chip_gen: v7x
topology: tpu7x:2x2x1
jax: 0.10.0
libtpu: 0.0.40
codegen_flags: <defaults>
</compile_context>

<pallas_src>
import functools

import jax
import jax.numpy as jnp
from jax.experimental import pallas as pl
from jax.experimental.pallas import tpu as pltpu


# ----------------------------- kernel body --------------------------------- #
def _mlp_kernel(x_ref, w1_ref, b1_ref, w2_ref, b2_ref, w3_ref, b3_ref, o_ref):
    # Layer 1: (TM, K=2005) @ (K, H1p).  K is not lane-aligned; Mosaic masks
    # the contracted remainder internally, so no HBM-side padding is needed.
    x = x_ref[...].astype(w1_ref.dtype)         # cast in VMEM (free vs. HBM copy)
    h1 = jnp.dot(x, w1_ref[...], preferred_element_type=jnp.float32)
    h1 = jnp.maximum(h1 + b1_ref[...], 0.0)     # bias + ReLU in f32
    # Layer 2: (TM, H1p) @ (H1p, H2p)
    h2 = jnp.dot(h1.astype(w2_ref.dtype), w2_ref[...],
                 preferred_element_type=jnp.float32)
    h2 = jnp.maximum(h2 + b2_ref[...], 0.0)
    # Layer 3: (TM, H2p) @ (H2p, OUTp)
    out = jnp.dot(h2.astype(w3_ref.dtype), w3_ref[...],
                  preferred_element_type=jnp.float32) + b3_ref[...]
    o_ref[...] = out.astype(o_ref.dtype)


# ------------------------------ helpers ------------------------------------ #
def _round_up(n, m):
    return ((n + m - 1) // m) * m


def prepare_params(w1, b1, w2, b2, w3, b3, compute_dtype=jnp.bfloat16):
    """One-time pad+cast of the weights (hoisted out of the per-call hot path).

    Only lane (output) dims are padded to multiples of 128; w1's K dim stays
    at 2005 so it matches the unpadded x.  All padding is zero -> math is
    unchanged.  Biases stay f32 (bias+ReLU runs in f32 inside the kernel).
    """
    in_dim, h1 = w1.shape
    h2 = w2.shape[1]
    out_dim = w3.shape[1]
    h1p, h2p, outp = (_round_up(d, 128) for d in (h1, h2, out_dim))

    def pad2(a, rows, cols, dtype):
        r, c = a.shape
        if (r, c) != (rows, cols):
            a = jnp.pad(a, ((0, rows - r), (0, cols - c)))
        return a.astype(dtype)

    w1p = pad2(w1, in_dim, h1p, compute_dtype)   # K stays unpadded (2005)
    w2p = pad2(w2, h1p, h2p, compute_dtype)
    w3p = pad2(w3, h2p, outp, compute_dtype)
    b1p = pad2(b1, 1, h1p, jnp.float32)
    b2p = pad2(b2, 1, h2p, jnp.float32)
    b3p = pad2(b3, 1, outp, jnp.float32)
    return (w1p, b1p, w2p, b2p, w3p, b3p), out_dim


# ------------------------------ wrapper ------------------------------------ #
@functools.partial(jax.jit, static_argnames=("out_dim", "block_m"))
def mlp_forward(x, w1p, b1p, w2p, b2p, w3p, b3p, *, out_dim, block_m=None):
    """x: (B, 2005) unpadded; padded params from prepare_params().  -> (B, out_dim) f32."""
    batch, in_dim = x.shape
    h1p, h2p, outp = w1p.shape[1], w2p.shape[1], w3p.shape[1]

    if block_m is None:
        if batch <= 256:
            block_m = _round_up(max(batch, 1), 8)
        else:
            # Multiple of 256 (full MXU M pass), capped at 512 so the f32 path
            # fits v5e's 16 MiB scoped-VMEM default with double buffering, and
            # sized so grid_m >= 2 for large batches (both TCs busy on v7x).
            block_m = min(512, max(256, 256 * ((batch // 2) // 256)))
    grid_m = pl.cdiv(batch, block_m)

    w_bytes = jnp.dtype(w1p.dtype).itemsize
    cost = pl.CostEstimate(
        flops=int(2 * batch * (in_dim * h1p + h1p * h2p + h2p * outp)),
        transcendentals=0,
        bytes_accessed=int(
            batch * in_dim * jnp.dtype(x.dtype).itemsize            # x read (unpadded)
            + (w1p.size + w2p.size + w3p.size) * w_bytes            # resident weights
            + (b1p.size + b2p.size + b3p.size) * 4                  # biases
            + batch * outp * 4                                      # output write
        ),
    )

    out_padded = pl.pallas_call(
        _mlp_kernel,
        out_shape=jax.ShapeDtypeStruct((batch, outp), jnp.float32),
        grid_spec=pltpu.PrefetchScalarGridSpec(
            num_scalar_prefetch=0,
            grid=(grid_m,),
            in_specs=[
                # x: streamed along batch, unpadded (last block dim == full
                # 2005 is legal; Mosaic pads/masks K internally in VMEM/vregs).
                pl.BlockSpec((block_m, in_dim), lambda i: (i, 0)),
                # Weights / biases: constant index_map -> DMA'd once, VMEM-resident.
                pl.BlockSpec((in_dim, h1p), lambda i: (0, 0)),
                pl.BlockSpec((1, h1p), lambda i: (0, 0)),
                pl.BlockSpec((h1p, h2p), lambda i: (0, 0)),
                pl.BlockSpec((1, h2p), lambda i: (0, 0)),
                pl.BlockSpec((h2p, outp), lambda i: (0, 0)),
                pl.BlockSpec((1, outp), lambda i: (0, 0)),
            ],
            # Lane-dense (outp = multiple of 128) output -> unmasked stores;
            # the narrow real output is sliced off afterwards (negligible bytes).
            out_specs=pl.BlockSpec((block_m, outp), lambda i: (i, 0)),
        ),
        compiler_params=pltpu.CompilerParams(
            dimension_semantics=("parallel",),   # batch axis shards across TCs (v7x)
        ),
        cost_estimate=cost,
    )(x, w1p, b1p, w2p, b2p, w3p, b3p)

    return out_padded[:, :out_dim]


# ------------------------------ init --------------------------------------- #
def init_params(key, in_size, h1, h2, out_size):
    """Deterministic init mimicking torch.nn.Linear default (U[-1/sqrt(fan_in), +])."""
    ks = jax.random.split(key, 6)

    def linear(kw, kb, fan_in, fan_out):
        bound = 1.0 / jnp.sqrt(jnp.float32(fan_in))
        w = jax.random.uniform(kw, (fan_in, fan_out), jnp.float32, -bound, bound)
        b = jax.random.uniform(kb, (1, fan_out), jnp.float32, -bound, bound)
        return w, b

    w1, b1 = linear(ks[0], ks[1], in_size, h1)
    w2, b2 = linear(ks[2], ks[3], h1, h2)
    w3, b3 = linear(ks[4], ks[5], h2, out_size)
    return w1, b1, w2, b2, w3, b3


def _reference(x, w1, b1, w2, b2, w3, b3):
    r = jnp.maximum(x @ w1 + b1, 0.0)
    r = jnp.maximum(r @ w2 + b2, 0.0)
    return r @ w3 + b3


# ------------------------------ test --------------------------------------- #
if __name__ == "__main__":
    IN_SIZE = 2005
    H1, H2 = 64, 32
    OUT_SIZE = 3

    key = jax.random.PRNGKey(0)
    k_x, k_p, k_x2 = jax.random.split(key, 3)
    raw_params = init_params(k_p, IN_SIZE, H1, H2, OUT_SIZE)

    # One-time weight pad/cast (kept out of the per-call jitted path).
    params_f32, out_dim = prepare_params(*raw_params, compute_dtype=jnp.float32)
    params_bf16, _ = prepare_params(*raw_params, compute_dtype=jnp.bfloat16)

    # 1) Small batch, f32 weights -> near bit-parity with the PyTorch module.
    x_small = jax.random.normal(k_x, (8, IN_SIZE), jnp.float32)
    out_small = jax.block_until_ready(
        mlp_forward(x_small, *params_f32, out_dim=out_dim))
    ref_small = _reference(x_small, *raw_params)
    assert out_small.shape == (8, OUT_SIZE)
    assert jnp.allclose(out_small, ref_small, atol=1e-3, rtol=1e-3), \
        "f32 small-batch mismatch vs reference"

    # 2) Multi-tile grid with a partial last tile (300 = 2*128 + 44), f32:
    #    checks that unpadded-batch masking of the final tile is correct.
    x_big = jax.random.normal(k_x2, (300, IN_SIZE), jnp.float32)
    out_big = jax.block_until_ready(
        mlp_forward(x_big, *params_f32, out_dim=out_dim, block_m=128))
    ref_big = _reference(x_big, *raw_params)
    assert out_big.shape == (300, OUT_SIZE)
    assert jnp.allclose(out_big, ref_big, atol=1e-3, rtol=1e-3), \
        "f32 tiled-batch (partial last tile) mismatch vs reference"

    # 3) Recommended bf16 weight path (f32 accumulation): halves matmul HBM
    #    traffic; inputs/weights are quantized -> accuracy/speed trade-off,
    #    so a looser tolerance vs the f32 reference is expected.
    out_bf16 = jax.block_until_ready(
        mlp_forward(x_big, *params_bf16, out_dim=out_dim, block_m=128))
    assert out_bf16.shape == (300, OUT_SIZE)
    assert bool(jnp.all(jnp.isfinite(out_bf16)))
    assert jnp.allclose(out_bf16, ref_big, atol=1e-1, rtol=1e-1), \
        "bf16 path drifted too far from f32 reference"

    print("KERNEL_OK")
</pallas_src>

<mosaic_0001>
module attributes {stable_mosaic.version = 11 : i64} {
  func.func @_mlp_kernel(%arg0: i32, %arg1: memref<8x2005xf32, #tpu.memory_space<vmem>>, %arg2: memref<2005x128xf32, #tpu.memory_space<vmem>>, %arg3: memref<1x128xf32, #tpu.memory_space<vmem>>, %arg4: memref<128x128xf32, #tpu.memory_space<vmem>>, %arg5: memref<1x128xf32, #tpu.memory_space<vmem>>, %arg6: memref<128x128xf32, #tpu.memory_space<vmem>>, %arg7: memref<1x128xf32, #tpu.memory_space<vmem>>, %arg8: memref<8x128xf32, #tpu.memory_space<vmem>>) attributes {dimension_semantics = [#tpu.dimension_semantics<parallel>], iteration_bounds = array<i64: 1>, scalar_prefetch = 0 : i64, scratch_operands = 0 : i64, tpu.core_type = #tpu.core_type<tc>, window_params = [{transform_indices = @transform_0, window_bounds = array<i64: 8, 2005>}, {pipeline_mode = #tpu.pipeline_mode<synchronous>, transform_indices = @transform_1, window_bounds = array<i64: 2005, 128>}, {pipeline_mode = #tpu.pipeline_mode<synchronous>, transform_indices = @transform_2, window_bounds = array<i64: 1, 128>}, {pipeline_mode = #tpu.pipeline_mode<synchronous>, transform_indices = @transform_3, window_bounds = array<i64: 128, 128>}, {pipeline_mode = #tpu.pipeline_mode<synchronous>, transform_indices = @transform_4, window_bounds = array<i64: 1, 128>}, {pipeline_mode = #tpu.pipeline_mode<synchronous>, transform_indices = @transform_5, window_bounds = array<i64: 128, 128>}, {pipeline_mode = #tpu.pipeline_mode<synchronous>, transform_indices = @transform_6, window_bounds = array<i64: 1, 128>}, {transform_indices = @transform_7, window_bounds = array<i64: 8, 128>}]} {
    %c0 = arith.constant 0 : index
    %c0_0 = arith.constant 0 : index
    %0 = vector.load %arg1[%c0, %c0_0] : memref<8x2005xf32, #tpu.memory_space<vmem>>, vector<8x2005xf32>
    %c0_1 = arith.constant 0 : index
    %c0_2 = arith.constant 0 : index
    %1 = vector.load %arg2[%c0_1, %c0_2] : memref<2005x128xf32, #tpu.memory_space<vmem>>, vector<2005x128xf32>
    %cst = arith.constant dense<0.000000e+00> : vector<8x128xf32>
    %2 = tpu.matmul %0, %1, %cst {dimension_numbers = #tpu.dot_dimension_numbers<[1], [0], [0], [1], [0, 0, 1, 1], [], []>} : vector<8x2005xf32>, vector<2005x128xf32>, vector<8x128xf32> -> vector<8x128xf32>
    %c0_3 = arith.constant 0 : index
    %c0_4 = arith.constant 0 : index
    %3 = vector.load %arg3[%c0_3, %c0_4] : memref<1x128xf32, #tpu.memory_space<vmem>>, vector<1x128xf32>
    %4 = vector.broadcast %3 : vector<1x128xf32> to vector<8x128xf32>
    %5 = arith.addf %2, %4 : vector<8x128xf32>
    %cst_5 = arith.constant 0.000000e+00 : f32
    %6 = vector.broadcast %cst_5 : f32 to vector<8x128xf32>
    %7 = arith.maximumf %5, %6 : vector<8x128xf32>
    %c0_6 = arith.constant 0 : index
    %c0_7 = arith.constant 0 : index
    %8 = vector.load %arg4[%c0_6, %c0_7] : memref<128x128xf32, #tpu.memory_space<vmem>>, vector<128x128xf32>
    %cst_8 = arith.constant dense<0.000000e+00> : vector<8x128xf32>
    %9 = tpu.matmul %7, %8, %cst_8 {dimension_numbers = #tpu.dot_dimension_numbers<[1], [0], [0], [1], [0, 0, 1, 1], [], []>} : vector<8x128xf32>, vector<128x128xf32>, vector<8x128xf32> -> vector<8x128xf32>
    %c0_9 = arith.constant 0 : index
    %c0_10 = arith.constant 0 : index
    %10 = vector.load %arg5[%c0_9, %c0_10] : memref<1x128xf32, #tpu.memory_space<vmem>>, vector<1x128xf32>
    %11 = vector.broadcast %10 : vector<1x128xf32> to vector<8x128xf32>
    %12 = arith.addf %9, %11 : vector<8x128xf32>
    %cst_11 = arith.constant 0.000000e+00 : f32
    %13 = vector.broadcast %cst_11 : f32 to vector<8x128xf32>
    %14 = arith.maximumf %12, %13 : vector<8x128xf32>
    %c0_12 = arith.constant 0 : index
    %c0_13 = arith.constant 0 : index
    %15 = vector.load %arg6[%c0_12, %c0_13] : memref<128x128xf32, #tpu.memory_space<vmem>>, vector<128x128xf32>
    %cst_14 = arith.constant dense<0.000000e+00> : vector<8x128xf32>
    %16 = tpu.matmul %14, %15, %cst_14 {dimension_numbers = #tpu.dot_dimension_numbers<[1], [0], [0], [1], [0, 0, 1, 1], [], []>} : vector<8x128xf32>, vector<128x128xf32>, vector<8x128xf32> -> vector<8x128xf32>
    %c0_15 = arith.constant 0 : index
    %c0_16 = arith.constant 0 : index
    %17 = vector.load %arg7[%c0_15, %c0_16] : memref<1x128xf32, #tpu.memory_space<vmem>>, vector<1x128xf32>
    %18 = vector.broadcast %17 : vector<1x128xf32> to vector<8x128xf32>
    %19 = arith.addf %16, %18 : vector<8x128xf32>
    %c0_17 = arith.constant 0 : index
    %c0_18 = arith.constant 0 : index
    %20 = vector.load %arg8[%c0_17, %c0_18] : memref<8x128xf32, #tpu.memory_space<vmem>>, vector<8x128xf32>
    tpu.vector_store %arg8[%c0_17, %c0_18], %19 {strides = array<i32>} : memref<8x128xf32, #tpu.memory_space<vmem>>, vector<8x128xf32>,
    return
  }
  func.func @transform_0(%arg0: i32) -> (i32, i32) {
    %c0_i32 = arith.constant 0 : i32
    %c0_i32_0 = arith.constant 0 : i32
    return %arg0, %c0_i32 : i32, i32
  }
  func.func @transform_1(%arg0: i32) -> (i32, i32) {
    %c0_i32 = arith.constant 0 : i32
    %c0_i32_0 = arith.constant 0 : i32
    %c0_i32_1 = arith.constant 0 : i32
    return %c0_i32, %c0_i32_0 : i32, i32
  }
  func.func @transform_2(%arg0: i32) -> (i32, i32) {
    %c0_i32 = arith.constant 0 : i32
    %c0_i32_0 = arith.constant 0 : i32
    %c0_i32_1 = arith.constant 0 : i32
    return %c0_i32, %c0_i32_0 : i32, i32
  }
  func.func @transform_3(%arg0: i32) -> (i32, i32) {
    %c0_i32 = arith.constant 0 : i32
    %c0_i32_0 = arith.constant 0 : i32
    %c0_i32_1 = arith.constant 0 : i32
    return %c0_i32, %c0_i32_0 : i32, i32
  }
  func.func @transform_4(%arg0: i32) -> (i32, i32) {
    %c0_i32 = arith.constant 0 : i32
    %c0_i32_0 = arith.constant 0 : i32
    %c0_i32_1 = arith.constant 0 : i32
    return %c0_i32, %c0_i32_0 : i32, i32
  }
  func.func @transform_5(%arg0: i32) -> (i32, i32) {
    %c0_i32 = arith.constant 0 : i32
    %c0_i32_0 = arith.constant 0 : i32
    %c0_i32_1 = arith.constant 0 : i32
    return %c0_i32, %c0_i32_0 : i32, i32
  }
  func.func @transform_6(%arg0: i32) -> (i32, i32) {
    %c0_i32 = arith.constant 0 : i32
    %c0_i32_0 = arith.constant 0 : i32
    %c0_i32_1 = arith.constant 0 : i32
    return %c0_i32, %c0_i32_0 : i32, i32
  }
  func.func @transform_7(%arg0: i32) -> (i32, i32) {
    %c0_i32 = arith.constant 0 : i32
    %c0_i32_0 = arith.constant 0 : i32
    return %arg0, %c0_i32 : i32, i32
  }
}

</mosaic_0001>

<bundles_post_ra>
// kernel: mlp_forward.1
= control target key start
LH: loop header
LB: loop body
LE: loop exit
PB: predicated region body
PF: predicated region fallthrough
CT: control target
= control target key end

     0   :  { %12 = vsyncpa [#allocation3], 0  ;;  %s2032_s0 = inlined_call_operand.hbm [shape: f32[8,2005], index: 0, kind: input, shape index: {}]   ;;  %s2033_s1 = inlined_call_operand.hbm [shape: f32[2005,128], index: 1, kind: input, shape index: {}]   ;;  %s2034_s2 = inlined_call_operand.vmem [shape: f32[1,128], index: 2, kind: input, shape index: {}]   ;;  %s2035_s3 = inlined_call_operand.hbm [shape: f32[128,128], index: 3, kind: input, shape index: {}]   ;;  %s2036_s4 = inlined_call_operand.vmem [shape: f32[1,128], index: 4, kind: input, shape index: {}]   ;;  %s2037_s5 = inlined_call_operand.hbm [shape: f32[128,128], index: 5, kind: input, shape index: {}]   ;;  %s2038_s6 = inlined_call_operand.vmem [shape: f32[1,128], index: 6, kind: input, shape index: {}]   ;;  %s2039_s7 = inlined_call_operand.vmem [shape: f32[8,128], index: 7, kind: output, shape index: {}]  }
   0x1   :  { %13 = vsyncpa [#allocation5], 0 }
   0x2   :  { %14 = vsyncpa [#allocation8], 0  ;;  %s1885_s24 = smov [#allocation4]   ;;  %s1791_s28 = scalar_lea.hbm %s2033_s1, 32128 }
   0x3   :  { %s30_s25 = sshll.u32 %s1885_s24, 4  ;;  %p1792_p0 = scmp.ne.s32.totalorder %s2033_s1, %s1791_s28  ;;  %s31_s25 = int_to_ptr.vmem [resolvable:$true] %s30_s25 }
   0x4   :  { %p1795_p1 = scmp.lt.u32.totalorder %s1791_s28, %s2033_s1 }
   0x6   :  { %p1797_p2 = pnand %p1795_p1, %p1792_p0 }
   0x8   :  { %1800 = shalt.err (!%p1797_p2)
}
   0x9   :  { %s1801_s10 = scalar_lea.vmem %s31_s25, 32128  ;;  %p1806_p4 = scmp.lt.s32.totalorder %s31_s25, %s31_s25 }
   0xa   :  { %p1802_p3 = scmp.ne.s32.totalorder %s31_s25, %s1801_s10  ;;  %p1807_p5 = scmp.lt.s32.totalorder %s1801_s10, %s1801_s10 }
   0xc   :  { %p1808_p6 = por %p1807_p5, %p1806_p4 }
   0xe   :  { %p1809_p7 = pnand %p1808_p6, %p1802_p3 }
  0x10   :  { %1812 = shalt.err (!%p1809_p7)
}
  0x11   :  { %s1886_s11 = smov 128   ;;  %s1887_s12 = smov 8  }
  0x12   :  { %36 = dma.hbm_to_vmem [thread:$0]  %s2033_s1, 32128, %s31_s25, [#allocation5], %s1886_s11, %s1886_s11, %s1887_s12  }
  0x13   :  { %s1888_s15 = smov [#allocation2]   ;;  %s1889_s17 = smov [#allocation6]  }
  0x14   :  { %s21_s16 = sshll.u32 %s1888_s15, 4  ;;  %s44_s18 = sshll.u32 %s1889_s17, 4  ;;  %s22_s16 = int_to_ptr.vmem [resolvable:$true] %s21_s16  ;;  %s45_s18 = int_to_ptr.vmem [resolvable:$true] %s44_s18 }
  0x15   :  { %s1813_s21 = scalar_lea.hbm %s2032_s0, 2048 }
  0x16   :  { %p1814_p8 = scmp.ne.s32.totalorder %s2032_s0, %s1813_s21  ;;  %p1817_p9 = scmp.lt.u32.totalorder %s1813_s21, %s2032_s0 }
  0x18   :  { %p1819_p10 = pnand %p1817_p9, %p1814_p8 }
  0x1a   :  { %1822 = shalt.err (!%p1819_p10)
}
  0x1b   :  { %s1823_s1 = scalar_lea.vmem %s22_s16, 2048  ;;  %p1828_p12 = scmp.lt.s32.totalorder %s22_s16, %s22_s16 }
  0x1c   :  { %p1824_p11 = scmp.ne.s32.totalorder %s22_s16, %s1823_s1  ;;  %p1829_p13 = scmp.lt.s32.totalorder %s1823_s1, %s1823_s1 }
  0x1e   :  { %p1830_p0 = por %p1829_p13, %p1828_p12 }
  0x20   :  { %p1831_p1 = pnand %p1830_p0, %p1824_p11 }
  0x22   :  { %1834 = shalt.err (!%p1831_p1)
}
  0x23   :  { %24 = dma.hbm_to_vmem [thread:$0]  %s2032_s0, 2048, %s22_s16, [#allocation3]  }
  0x24   :  { %s1835_s30 = scalar_lea.hbm %s2035_s3, 2048 }
  0x25   :  { %p1836_p2 = scmp.ne.s32.totalorder %s2035_s3, %s1835_s30  ;;  %p1839_p3 = scmp.lt.u32.totalorder %s1835_s30, %s2035_s3 }
  0x27   :  { %p1841_p4 = pnand %p1839_p3, %p1836_p2 }
  0x29   :  { %1844 = shalt.err (!%p1841_p4)
}
  0x2a   :  { %s1845_s14 = scalar_lea.vmem %s45_s18, 2048  ;;  %p1850_p6 = scmp.lt.s32.totalorder %s45_s18, %s45_s18 }
  0x2b   :  { %p1846_p5 = scmp.ne.s32.totalorder %s45_s18, %s1845_s14  ;;  %p1851_p7 = scmp.lt.s32.totalorder %s1845_s14, %s1845_s14 }
  0x2d   :  { %p1852_p8 = por %p1851_p7, %p1850_p6 }
  0x2f   :  { %p1853_p9 = pnand %p1852_p8, %p1846_p5 }
  0x31   :  { %1856 = shalt.err (!%p1853_p9)
}
  0x32   :  { %50 = dma.hbm_to_vmem [thread:$0]  %s2035_s3, 2048, %s45_s18, [#allocation5], %s1886_s11, %s1886_s11, %s1887_s12  }
  0x33   :  { %s1890_s16 = smov [#allocation7]   ;;  %s1857_s21 = scalar_lea.hbm %s2037_s5, 2048 }
  0x34   :  { %s58_s17 = sshll.u32 %s1890_s16, 4  ;;  %p1858_p10 = scmp.ne.s32.totalorder %s2037_s5, %s1857_s21  ;;  %s59_s17 = int_to_ptr.vmem [resolvable:$true] %s58_s17 }
  0x35   :  { %p1861_p11 = scmp.lt.u32.totalorder %s1857_s21, %s2037_s5 }
  0x37   :  { %p1863_p12 = pnand %p1861_p11, %p1858_p10 }
  0x39   :  { %1866 = shalt.err (!%p1863_p12)
}
  0x3a   :  { %s1867_s1 = scalar_lea.vmem %s59_s17, 2048  ;;  %p1872_p0 = scmp.lt.s32.totalorder %s59_s17, %s59_s17 }
  0x3b   :  { %p1868_p13 = scmp.ne.s32.totalorder %s59_s17, %s1867_s1  ;;  %p1873_p1 = scmp.lt.s32.totalorder %s1867_s1, %s1867_s1 }
  0x3d   :  { %p1874_p2 = por %p1873_p1, %p1872_p0 }
  0x3f   :  { %p1875_p3 = pnand %p1874_p2, %p1868_p13 }
  0x41   :  { %1878 = shalt.err (!%p1875_p3)
}
  0x42   :  { %64 = dma.hbm_to_vmem [thread:$0]  %s2037_s5, 2048, %s59_s17, [#allocation8], %s1886_s11, %s1886_s11, %s1887_s12  }
  0x43   :  { %1879 = dma.done.wait [#allocation3], 2048  }
  0x44   :  { %1880 = vsyncadd [#allocation3], 4294965248 }
  0x45   :  { %1881 = dma.done.wait [#allocation5], 34176  }
  0x46   :  { %1882 = vsyncadd [#allocation5], 4294933120 }
  0x47   :  { %1883 = dma.done.wait [#allocation8], 2048  }
  0x48   :  { %1884 = vsyncadd [#allocation8], 4294965248  ;;  %v111_v0 = vld [vmem:[#allocation4 + $0x80] sm:$0xff]  ;;  %v112_v1 = vld [vmem:[#allocation4 + $0x88] sm:$0xff]  ;;  %vm353_vm0 = vcmask 695296   ;;  %vm357_vm1 = vcmask 1044480  }
  0x49   :  { %v143_v2 = vld [vmem:[#allocation4 + $0x180] sm:$0xff]  ;;  %v1471_v3 = vpack.c.bf16 %v112_v1, %v111_v0  ;;  %v144_v4 = vld [vmem:[#allocation4 + $0x188] sm:$0xff]  ;;  %v113_v11 = vld [vmem:[#allocation4 + $0x90] sm:$0xff]  ;;  %vm1893_vm2 = vmmov 0  }
  0x4a   :  { %v95_v5 = vld [vmem:[#allocation4] sm:$0xff]  ;;  %v96_v6 = vld [vmem:[#allocation4 + $0x8] sm:$0xff]  ;;  %v1503_v7 = vpack.c.bf16 %v144_v4, %v143_v2  ;;  %v114_v13 = vld [vmem:[#allocation4 + $0x98] sm:$0xff] }
  0x4b   :  { %v1473_v8 = vpack.c.bf16 %v96_v6, %v95_v5  ;;  %v127_v9 = vld [vmem:[#allocation4 + $0x100] sm:$0xff]  ;;  %v128_v10 = vld [vmem:[#allocation4 + $0x108] sm:$0xff]  ;;  %1472 = vmatprep.subr.bf16.mxu0 %v1471_v3  ;;  %v145_v14 = vld [vmem:[#allocation4 + $0x190] sm:$0xff]  ;;  %v1475_v16 = vpack.c.bf16 %v114_v13, %v113_v11 }
  0x4c   :  { %v1505_v12 = vpack.c.bf16 %v128_v10, %v127_v9  ;;  %v146_v15 = vld [vmem:[#allocation4 + $0x198] sm:$0xff]  ;;  %1504 = vmatprep.subr.bf16.mxu1 %v1503_v7  ;;  %v97_v18 = vld [vmem:[#allocation4 + $0x10] sm:$0xff]  ;;  %v115_v23 = vld [vmem:[#allocation4 + $0xa0] sm:$0xff] }
  0x4d   :  { %1474 = vmatpush3.bf16.msra.mxu0 %v1473_v8  ;;  %v1507_v17 = vpack.c.bf16 %v146_v15, %v145_v14  ;;  %v98_v19 = vld [vmem:[#allocation4 + $0x18] sm:$0xff]  ;;  %v129_v20 = vld [vmem:[#allocation4 + $0x110] sm:$0xff]  ;;  %v116_v24 = vld [vmem:[#allocation4 + $0xa8] sm:$0xff] }
  0x4e   :  { %1506 = vmatpush3.bf16.msra.mxu1 %v1505_v12  ;;  %v1477_v21 = vpack.c.bf16 %v98_v19, %v97_v18  ;;  %v130_v22 = vld [vmem:[#allocation4 + $0x118] sm:$0xff]  ;;  %1476 = vmatprep.subr.bf16.mxu0 %v1475_v16  ;;  %v1479_v26 = vpack.c.bf16 %v116_v24, %v115_v23  ;;  %v147_v27 = vld [vmem:[#allocation4 + $0x1a0] sm:$0xff]  ;;  %v148_v28 = vld [vmem:[#allocation4 + $0x1a8] sm:$0xff] }
  0x4f   :  { %1508 = vmatprep.subr.bf16.mxu1 %v1507_v17  ;;  %v1509_v25 = vpack.c.bf16 %v130_v22, %v129_v20  ;;  %v99_v29 = vld [vmem:[#allocation4 + $0x20] sm:$0xff]  ;;  %v1511_v30 = vpack.c.bf16 %v148_v28, %v147_v27  ;;  %v100_v31 = vld [vmem:[#allocation4 + $0x28] sm:$0xff]  ;;  %v117_v35 = vld [vmem:[#allocation4 + $0xb0] sm:$0xff] }
  0x50   :  { %v131_v32 = vld [vmem:[#allocation4 + $0x120] sm:$0xff]  ;;  %v132_v33 = vld [vmem:[#allocation4 + $0x128] sm:$0xff]  ;;  %v1481_v34 = vpack.c.bf16 %v100_v31, %v99_v29  ;;  %v118_v36 = vld [vmem:[#allocation4 + $0xb8] sm:$0xff] }
  0x51   :  { %1478 = vmatpush3.bf16.msra.mxu0 %v1477_v21  ;;  %v149_v37 = vld [vmem:[#allocation4 + $0x1b0] sm:$0xff]  ;;  %v1513_v38 = vpack.c.bf16 %v132_v33, %v131_v32  ;;  %v1483_v39 = vpack.c.bf16 %v118_v36, %v117_v35  ;;  %v150_v40 = vld [vmem:[#allocation4 + $0x1b8] sm:$0xff]  ;;  %v119_v46 = vld [vmem:[#allocation4 + $0xc0] sm:$0xff] }
  0x52   :  { %1510 = vmatpush3.bf16.msra.mxu1 %v1509_v25  ;;  %1480 = vmatprep.subr.bf16.mxu0 %v1479_v26  ;;  %v101_v41 = vld [vmem:[#allocation4 + $0x30] sm:$0xff]  ;;  %v102_v42 = vld [vmem:[#allocation4 + $0x38] sm:$0xff]  ;;  %v1515_v43 = vpack.c.bf16 %v150_v40, %v149_v37  ;;  %v120_v47 = vld [vmem:[#allocation4 + $0xc8] sm:$0xff] }
  0x53   :  { %1512 = vmatprep.subr.bf16.mxu1 %v1511_v30  ;;  %v133_v44 = vld [vmem:[#allocation4 + $0x130] sm:$0xff]  ;;  %v134_v45 = vld [vmem:[#allocation4 + $0x138] sm:$0xff]  ;;  %v151_v48 = vld [vmem:[#allocation4 + $0x1c0] sm:$0xff]  ;;  %v1485_v50 = vpack.c.bf16 %v102_v42, %v101_v41  ;;  %v1487_v52 = vpack.c.bf16 %v120_v47, %v119_v46 }
  0x54   :  { %v152_v49 = vld [vmem:[#allocation4 + $0x1c8] sm:$0xff]  ;;  %v1517_v51 = vpack.c.bf16 %v134_v45, %v133_v44  ;;  %v103_v53 = vld [vmem:[#allocation4 + $0x40] sm:$0xff]  ;;  %v121_v58 = vld [vmem:[#allocation4 + $0xd0] sm:$0xff] }
  0x55   :  { %1482 = vmatpush3.bf16.msra.mxu0 %v1481_v34  ;;  %v104_v54 = vld [vmem:[#allocation4 + $0x48] sm:$0xff]  ;;  %v135_v55 = vld [vmem:[#allocation4 + $0x140] sm:$0xff]  ;;  %v1519_v56 = vpack.c.bf16 %v152_v49, %v151_v48  ;;  %v122_v59 = vld [vmem:[#allocation4 + $0xd8] sm:$0xff] }
  0x56   :  { %1514 = vmatpush3.bf16.msra.mxu1 %v1513_v38  ;;  %1484 = vmatprep.subr.bf16.mxu0 %v1483_v39  ;;  %v136_v57 = vld [vmem:[#allocation4 + $0x148] sm:$0xff]  ;;  %v153_v60 = vld [vmem:[#allocation4 + $0x1d0] sm:$0xff]  ;;  %v154_v61 = vld [vmem:[#allocation4 + $0x1d8] sm:$0xff]  ;;  %v1489_v62 = vpack.c.bf16 %v104_v54, %v103_v53  ;;  %v1491_v0 = vpack.c.bf16 %v122_v59, %v121_v58 }
  0x57   :  { %1516 = vmatprep.subr.bf16.mxu1 %v1515_v43  ;;  %v1521_v63 = vpack.c.bf16 %v136_v57, %v135_v55  ;;  %v105_v1 = vld [vmem:[#allocation4 + $0x50] sm:$0xff]  ;;  %v106_v2 = vld [vmem:[#allocation4 + $0x58] sm:$0xff]  ;;  %v1523_v4 = vpack.c.bf16 %v154_v61, %v153_v60  ;;  %v123_v6 = vld [vmem:[#allocation4 + $0xe0] sm:$0xff] }
  0x58   :  { %v137_v3 = vld [vmem:[#allocation4 + $0x150] sm:$0xff]  ;;  %v138_v5 = vld [vmem:[#allocation4 + $0x158] sm:$0xff]  ;;  %v124_v7 = vld [vmem:[#allocation4 + $0xe8] sm:$0xff]  ;;  %v1493_v10 = vpack.c.bf16 %v106_v2, %v105_v1 }
  0x59   :  { %1486 = vmatpush3.bf16.msra.mxu0 %v1485_v50  ;;  %v155_v8 = vld [vmem:[#allocation4 + $0x1e0] sm:$0xff]  ;;  %v156_v9 = vld [vmem:[#allocation4 + $0x1e8] sm:$0xff]  ;;  %v1525_v13 = vpack.c.bf16 %v138_v5, %v137_v3  ;;  %v1495_v14 = vpack.c.bf16 %v124_v7, %v123_v6  ;;  %v82_v17 = vld [vmem:[#allocation2 + $0x18] sm:$0xff] }
  0x5a   :  { %1518 = vmatpush3.bf16.msra.mxu1 %v1517_v51  ;;  %1488 = vmatprep.subr.bf16.mxu0 %v1487_v52  ;;  %v107_v11 = vld [vmem:[#allocation4 + $0x60] sm:$0xff]  ;;  %v108_v12 = vld [vmem:[#allocation4 + $0x68] sm:$0xff]  ;;  %v1527_v18 = vpack.c.bf16 %v156_v9, %v155_v8  ;;  %v125_v20 = vld [vmem:[#allocation4 + $0xf0] sm:$0xff] }
  0x5b   :  { %1520 = vmatprep.subr.bf16.mxu1 %v1519_v56  ;;  %v139_v15 = vld [vmem:[#allocation4 + $0x160] sm:$0xff]  ;;  %v80_v16 = vld [vmem:[#allocation2 + $0x8] sm:$0xff]  ;;  %v126_v21 = vld [vmem:[#allocation4 + $0xf8] sm:$0xff]  ;;  %495 = vmatprep.mubr.f32.mxu1 %v82_v17  ;;  %v1497_v24 = vpack.c.bf16 %v108_v12, %v107_v11 }
  0x5c   :  { %v140_v19 = vld [vmem:[#allocation4 + $0x168] sm:$0xff]  ;;  %425 = vmatprep.mubr.f32.mxu0 %v80_v16  ;;  %v157_v22 = vld [vmem:[#allocation4 + $0x1f0] sm:$0xff]  ;;  %v158_v23 = vld [vmem:[#allocation4 + $0x1f8] sm:$0xff]  ;;  %v1499_v26 = vpack.c.bf16 %v126_v21, %v125_v20 }
  0x5d   :  { %1490 = vmatpush3.bf16.msra.mxu0 %v1489_v62  ;;  %v1529_v25 = vpack.c.bf16 %v140_v19, %v139_v15  ;;  %v109_v27 = vld [vmem:[#allocation4 + $0x70] sm:$0xff]  ;;  %v110_v28 = vld [vmem:[#allocation4 + $0x78] sm:$0xff]  ;;  %v1531_v30 = vpack.c.bf16 %v158_v23, %v157_v22  ;;  %v175_v32 = vld [vmem:[#allocation4 + $0x280] sm:$0xff] }
  0x5e   :  { %1522 = vmatpush3.bf16.msra.mxu1 %v1521_v63  ;;  %1492 = vmatprep.subr.bf16.mxu0 %v1491_v0  ;;  %v141_v29 = vld [vmem:[#allocation4 + $0x170] sm:$0xff]  ;;  %v142_v31 = vld [vmem:[#allocation4 + $0x178] sm:$0xff]  ;;  %v176_v33 = vld [vmem:[#allocation4 + $0x288] sm:$0xff]  ;;  %v1501_v36 = vpack.c.bf16 %v110_v28, %v109_v27 }
  0x5f   :  { %1524 = vmatprep.subr.bf16.mxu1 %v1523_v4  ;;  %v207_v34 = vld [vmem:[#allocation4 + $0x380] sm:$0xff]  ;;  %v208_v35 = vld [vmem:[#allocation4 + $0x388] sm:$0xff]  ;;  %v1533_v37 = vpack.c.bf16 %v142_v31, %v141_v29  ;;  %v1535_v38 = vpack.c.bf16 %v176_v33, %v175_v32  ;;  %v177_v44 = vld [vmem:[#allocation4 + $0x290] sm:$0xff] }
  0x60   :  { %v159_v39 = vld [vmem:[#allocation4 + $0x200] sm:$0xff]  ;;  %v160_v40 = vld [vmem:[#allocation4 + $0x208] sm:$0xff]  ;;  %v1567_v42 = vpack.c.bf16 %v208_v35, %v207_v34  ;;  %v178_v45 = vld [vmem:[#allocation4 + $0x298] sm:$0xff] }
  0x61   :  { %1494 = vmatpush3.bf16.msra.mxu0 %v1493_v10  ;;  %v191_v41 = vld [vmem:[#allocation4 + $0x300] sm:$0xff]  ;;  %v192_v43 = vld [vmem:[#allocation4 + $0x308] sm:$0xff]  ;;  %v209_v46 = vld [vmem:[#allocation4 + $0x390] sm:$0xff]  ;;  %v1537_v50 = vpack.c.bf16 %v160_v40, %v159_v39  ;;  %v1539_v52 = vpack.c.bf16 %v178_v45, %v177_v44 }
  0x62   :  { %1526 = vmatpush3.bf16.msra.mxu1 %v1525_v13  ;;  %1496 = vmatprep.subr.bf16.mxu0 %v1495_v14  ;;  %v210_v47 = vld [vmem:[#allocation4 + $0x398] sm:$0xff]  ;;  %v79_v48 = vld [vmem:[#allocation2] sm:$0xff]  ;;  %v81_v49 = vld [vmem:[#allocation2 + $0x10] sm:$0xff]  ;;  %v1569_v51 = vpack.c.bf16 %v192_v43, %v191_v41 }
  0x63   :  { %1528 = vmatprep.subr.bf16.mxu1 %v1527_v18  ;;  %v161_v53 = vld [vmem:[#allocation4 + $0x210] sm:$0xff]  ;;  %v162_v54 = vld [vmem:[#allocation4 + $0x218] sm:$0xff]  ;;  %v1571_v56 = vpack.c.bf16 %v210_v47, %v209_v46  ;;  %v179_v58 = vld [vmem:[#allocation4 + $0x2a0] sm:$0xff] }
  0x64   :  { %v193_v55 = vld [vmem:[#allocation4 + $0x310] sm:$0xff]  ;;  %v194_v57 = vld [vmem:[#allocation4 + $0x318] sm:$0xff]  ;;  %v180_v59 = vld [vmem:[#allocation4 + $0x2a8] sm:$0xff]  ;;  %v1541_v62 = vpack.c.bf16 %v162_v54, %v161_v53 }
  0x65   :  { %1498 = vmatpush3.bf16.msra.mxu0 %v1497_v24  ;;  %v211_v60 = vld [vmem:[#allocation4 + $0x3a0] sm:$0xff]  ;;  %v212_v61 = vld [vmem:[#allocation4 + $0x3a8] sm:$0xff]  ;;  %v1573_v63 = vpack.c.bf16 %v194_v57, %v193_v55  ;;  %v1543_v0 = vpack.c.bf16 %v180_v59, %v179_v58  ;;  %v181_v6 = vld [vmem:[#allocation4 + $0x2b0] sm:$0xff] }
  0x66   :  { %1530 = vmatpush3.bf16.msra.mxu1 %v1529_v25  ;;  %1500 = vmatprep.subr.bf16.mxu0 %v1499_v26  ;;  %v163_v1 = vld [vmem:[#allocation4 + $0x220] sm:$0xff]  ;;  %v164_v2 = vld [vmem:[#allocation4 + $0x228] sm:$0xff]  ;;  %v1575_v4 = vpack.c.bf16 %v212_v61, %v211_v60  ;;  %v182_v7 = vld [vmem:[#allocation4 + $0x2b8] sm:$0xff] }
  0x67   :  { %1532 = vmatprep.subr.bf16.mxu1 %v1531_v30  ;;  %v195_v3 = vld [vmem:[#allocation4 + $0x320] sm:$0xff]  ;;  %v196_v5 = vld [vmem:[#allocation4 + $0x328] sm:$0xff]  ;;  %v213_v8 = vld [vmem:[#allocation4 + $0x3b0] sm:$0xff]  ;;  %v1545_v10 = vpack.c.bf16 %v164_v2, %v163_v1  ;;  %v1547_v12 = vpack.c.bf16 %v182_v7, %v181_v6 }
  0x68   :  { %v214_v9 = vld [vmem:[#allocation4 + $0x3b8] sm:$0xff]  ;;  %v1577_v11 = vpack.c.bf16 %v196_v5, %v195_v3  ;;  %v165_v13 = vld [vmem:[#allocation4 + $0x230] sm:$0xff]  ;;  %v183_v18 = vld [vmem:[#allocation4 + $0x2c0] sm:$0xff] }
  0x69   :  { %1502 = vmatpush3.bf16.msra.mxu0 %v1501_v36  ;;  %v166_v14 = vld [vmem:[#allocation4 + $0x238] sm:$0xff]  ;;  %v197_v15 = vld [vmem:[#allocation4 + $0x330] sm:$0xff]  ;;  %v1579_v16 = vpack.c.bf16 %v214_v9, %v213_v8  ;;  %v184_v19 = vld [vmem:[#allocation4 + $0x2c8] sm:$0xff] }
  0x6a   :  { %1534 = vmatpush3.bf16.msra.mxu1 %v1533_v37  ;;  %1536 = vmatprep.subr.bf16.mxu0 %v1535_v38  ;;  %v198_v17 = vld [vmem:[#allocation4 + $0x338] sm:$0xff]  ;;  %v215_v20 = vld [vmem:[#allocation4 + $0x3c0] sm:$0xff]  ;;  %v216_v21 = vld [vmem:[#allocation4 + $0x3c8] sm:$0xff]  ;;  %v1549_v22 = vpack.c.bf16 %v166_v14, %v165_v13  ;;  %v1551_v26 = vpack.c.bf16 %v184_v19, %v183_v18 }
  0x6b   :  { %1568 = vmatprep.subr.bf16.mxu1 %v1567_v42  ;;  %v84_v23 = vld [vmem:[#allocation2 + $0x28] sm:$0xff]  ;;  %v86_v24 = vld [vmem:[#allocation2 + $0x38] sm:$0xff]  ;;  %v1581_v25 = vpack.c.bf16 %v198_v17, %v197_v15  ;;  %v167_v27 = vld [vmem:[#allocation4 + $0x240] sm:$0xff]  ;;  %v1583_v30 = vpack.c.bf16 %v216_v21, %v215_v20 }
  0x6c   :  { %426 = vmatmul.mubr.f32.vlgmr.msra.gmra.mrb[0].mxu0 %v79_v48  ;;  %v168_v28 = vld [vmem:[#allocation4 + $0x248] sm:$0xff]  ;;  %v199_v29 = vld [vmem:[#allocation4 + $0x340] sm:$0xff]  ;;  %v185_v32 = vld [vmem:[#allocation4 + $0x2d0] sm:$0xff] }
  0x6d   :  { %496 = vmatmul.mubr.f32.vlgmr.msra.gmra.mrb[0].mxu1 %v81_v49  ;;  %1538 = vmatpush3.bf16.msra.mxu0 %v1537_v50  ;;  %v200_v31 = vld [vmem:[#allocation4 + $0x348] sm:$0xff]  ;;  %v186_v33 = vld [vmem:[#allocation4 + $0x2d8] sm:$0xff]  ;;  %v217_v34 = vld [vmem:[#allocation4 + $0x3d0] sm:$0xff]  ;;  %v1553_v36 = vpack.c.bf16 %v168_v28, %v167_v27 }
  0x6e   :  { %1570 = vmatpush3.bf16.msra.mxu1 %v1569_v51  ;;  %1540 = vmatprep.subr.bf16.mxu0 %v1539_v52  ;;  %v218_v35 = vld [vmem:[#allocation4 + $0x3d8] sm:$0xff]  ;;  %v1585_v37 = vpack.c.bf16 %v200_v31, %v199_v29  ;;  %v1555_v38 = vpack.c.bf16 %v186_v33, %v185_v32  ;;  %v169_v39 = vld [vmem:[#allocation4 + $0x250] sm:$0xff]  ;;  %v187_v44 = vld [vmem:[#allocation4 + $0x2e0] sm:$0xff] }
  0x6f   :  { %1572 = vmatprep.subr.bf16.mxu1 %v1571_v56  ;;  %565 = vmatprep.mubr.f32.mxu0 %v84_v23  ;;  %v170_v40 = vld [vmem:[#allocation4 + $0x258] sm:$0xff]  ;;  %v201_v41 = vld [vmem:[#allocation4 + $0x350] sm:$0xff]  ;;  %v1587_v42 = vpack.c.bf16 %v218_v35, %v217_v34  ;;  %v188_v45 = vld [vmem:[#allocation4 + $0x2e8] sm:$0xff] }
  0x70   :  { %635 = vmatprep.mubr.f32.mxu1 %v86_v24  ;;  %v202_v43 = vld [vmem:[#allocation4 + $0x358] sm:$0xff]  ;;  %v219_v46 = vld [vmem:[#allocation4 + $0x3e0] sm:$0xff]  ;;  %v220_v47 = vld [vmem:[#allocation4 + $0x3e8] sm:$0xff]  ;;  %v1557_v48 = vpack.c.bf16 %v170_v40, %v169_v39  ;;  %v1559_v50 = vpack.c.bf16 %v188_v45, %v187_v44 }
  0x71   :  { %1542 = vmatpush3.bf16.msra.mxu0 %v1541_v62  ;;  %v1589_v49 = vpack.c.bf16 %v202_v43, %v201_v41  ;;  %v171_v51 = vld [vmem:[#allocation4 + $0x260] sm:$0xff]  ;;  %v172_v52 = vld [vmem:[#allocation4 + $0x268] sm:$0xff]  ;;  %v1591_v54 = vpack.c.bf16 %v220_v47, %v219_v46  ;;  %v189_v56 = vld [vmem:[#allocation4 + $0x2f0] sm:$0xff] }
  0x72   :  { %1574 = vmatpush3.bf16.msra.mxu1 %v1573_v63  ;;  %1544 = vmatprep.subr.bf16.mxu0 %v1543_v0  ;;  %v203_v53 = vld [vmem:[#allocation4 + $0x360] sm:$0xff]  ;;  %v204_v55 = vld [vmem:[#allocation4 + $0x368] sm:$0xff]  ;;  %v190_v57 = vld [vmem:[#allocation4 + $0x2f8] sm:$0xff]  ;;  %v1561_v60 = vpack.c.bf16 %v172_v52, %v171_v51 }
  0x73   :  { %1576 = vmatprep.subr.bf16.mxu1 %v1575_v4  ;;  %v221_v58 = vld [vmem:[#allocation4 + $0x3f0] sm:$0xff]  ;;  %v222_v59 = vld [vmem:[#allocation4 + $0x3f8] sm:$0xff]  ;;  %v1593_v61 = vpack.c.bf16 %v204_v55, %v203_v53  ;;  %v1563_v62 = vpack.c.bf16 %v190_v57, %v189_v56  ;;  %v239_v4 = vld [vmem:[#allocation4 + $0x480] sm:$0xff] }
  0x74   :  { %v173_v63 = vld [vmem:[#allocation4 + $0x270] sm:$0xff]  ;;  %v174_v0 = vld [vmem:[#allocation4 + $0x278] sm:$0xff]  ;;  %v1595_v2 = vpack.c.bf16 %v222_v59, %v221_v58  ;;  %v240_v5 = vld [vmem:[#allocation4 + $0x488] sm:$0xff] }
  0x75   :  { %1546 = vmatpush3.bf16.msra.mxu0 %v1545_v10  ;;  %v205_v1 = vld [vmem:[#allocation4 + $0x370] sm:$0xff]  ;;  %v206_v3 = vld [vmem:[#allocation4 + $0x378] sm:$0xff]  ;;  %v271_v6 = vld [vmem:[#allocation4 + $0x580] sm:$0xff]  ;;  %v1565_v8 = vpack.c.bf16 %v174_v0, %v173_v63  ;;  %v1599_v10 = vpack.c.bf16 %v240_v5, %v239_v4 }
  0x76   :  { %1578 = vmatpush3.bf16.msra.mxu1 %v1577_v11  ;;  %1548 = vmatprep.subr.bf16.mxu0 %v1547_v12  ;;  %v272_v7 = vld [vmem:[#allocation4 + $0x588] sm:$0xff]  ;;  %v1597_v9 = vpack.c.bf16 %v206_v3, %v205_v1  ;;  %v223_v11 = vld [vmem:[#allocation4 + $0x400] sm:$0xff]  ;;  %v242_v17 = vld [vmem:[#allocation4 + $0x498] sm:$0xff] }
  0x77   :  { %1580 = vmatprep.subr.bf16.mxu1 %v1579_v16  ;;  %v224_v12 = vld [vmem:[#allocation4 + $0x408] sm:$0xff]  ;;  %v255_v13 = vld [vmem:[#allocation4 + $0x500] sm:$0xff]  ;;  %v1631_v14 = vpack.c.bf16 %v272_v7, %v271_v6  ;;  %v241_v16 = vld [vmem:[#allocation4 + $0x490] sm:$0xff] }
  0x78   :  { %v256_v15 = vld [vmem:[#allocation4 + $0x508] sm:$0xff]  ;;  %v273_v18 = vld [vmem:[#allocation4 + $0x590] sm:$0xff]  ;;  %v274_v19 = vld [vmem:[#allocation4 + $0x598] sm:$0xff]  ;;  %v1603_v24 = vpack.c.bf16 %v242_v17, %v241_v16 }
  0x79   :  { %1550 = vmatpush3.bf16.msra.mxu0 %v1549_v22  ;;  %v83_v20 = vld [vmem:[#allocation2 + $0x20] sm:$0xff]  ;;  %v85_v21 = vld [vmem:[#allocation2 + $0x30] sm:$0xff]  ;;  %v1601_v22 = vpack.c.bf16 %v224_v12, %v223_v11  ;;  %v1633_v23 = vpack.c.bf16 %v256_v15, %v255_v13  ;;  %v1635_v28 = vpack.c.bf16 %v274_v19, %v273_v18  ;;  %v258_v29 = vld [vmem:[#allocation4 + $0x518] sm:$0xff] }
  0x7a   :  { %1582 = vmatpush3.bf16.msra.mxu1 %v1581_v25  ;;  %1552 = vmatprep.subr.bf16.mxu0 %v1551_v26  ;;  %v225_v25 = vld [vmem:[#allocation4 + $0x410] sm:$0xff]  ;;  %v226_v26 = vld [vmem:[#allocation4 + $0x418] sm:$0xff]  ;;  %v244_v31 = vld [vmem:[#allocation4 + $0x4a8] sm:$0xff] }
  0x7b   :  { %1584 = vmatprep.subr.bf16.mxu1 %v1583_v30  ;;  %v257_v27 = vld [vmem:[#allocation4 + $0x510] sm:$0xff]  ;;  %v243_v30 = vld [vmem:[#allocation4 + $0x4a0] sm:$0xff]  ;;  %v276_v33 = vld [vmem:[#allocation4 + $0x5a8] sm:$0xff]  ;;  %v1605_v35 = vpack.c.bf16 %v226_v26, %v225_v25 }
  0x7c   :  { %v275_v32 = vld [vmem:[#allocation4 + $0x5a0] sm:$0xff]  ;;  %v88_v34 = vld [vmem:[#allocation2 + $0x48] sm:$0xff]  ;;  %v245_v44 = vld [vmem:[#allocation4 + $0x4b0] sm:$0xff] }
  0x7d   :  { %1554 = vmatpush3.bf16.msra.mxu0 %v1553_v36  ;;  %v90_v36 = vld [vmem:[#allocation2 + $0x58] sm:$0xff]  ;;  %v227_v39 = vld [vmem:[#allocation4 + $0x420] sm:$0xff]  ;;  %v228_v40 = vld [vmem:[#allocation4 + $0x428] sm:$0xff] }
  0x7e   :  { %1586 = vmatpush3.bf16.msra.mxu1 %v1585_v37  ;;  %1556 = vmatprep.subr.bf16.mxu0 %v1555_v38  ;;  %v1637_v37 = vpack.c.bf16 %v258_v29, %v257_v27  ;;  %v1607_v38 = vpack.c.bf16 %v244_v31, %v243_v30  ;;  %v259_v41 = vld [vmem:[#allocation4 + $0x520] sm:$0xff]  ;;  %v260_v43 = vld [vmem:[#allocation4 + $0x528] sm:$0xff]  ;;  %v246_v45 = vld [vmem:[#allocation4 + $0x4b8] sm:$0xff] }
  0x7f   :  { %1588 = vmatprep.subr.bf16.mxu1 %v1587_v42  ;;  %v1639_v42 = vpack.c.bf16 %v276_v33, %v275_v32  ;;  %v277_v46 = vld [vmem:[#allocation4 + $0x5b0] sm:$0xff]  ;;  %v278_v47 = vld [vmem:[#allocation4 + $0x5b8] sm:$0xff]  ;;  %v247_v56 = vld [vmem:[#allocation4 + $0x4c0] sm:$0xff] }
  0x80   :  { %v229_v51 = vld [vmem:[#allocation4 + $0x430] sm:$0xff]  ;;  %v230_v52 = vld [vmem:[#allocation4 + $0x438] sm:$0xff]  ;;  %v248_v57 = vld [vmem:[#allocation4 + $0x4c8] sm:$0xff] }
  0x81   :  { %1558 = vmatpush3.bf16.msra.mxu0 %v1557_v48  ;;  %v1609_v48 = vpack.c.bf16 %v228_v40, %v227_v39  ;;  %v261_v53 = vld [vmem:[#allocation4 + $0x530] sm:$0xff]  ;;  %v262_v55 = vld [vmem:[#allocation4 + $0x538] sm:$0xff]  ;;  %v279_v58 = vld [vmem:[#allocation4 + $0x5c0] sm:$0xff] }
  0x82   :  { %1590 = vmatpush3.bf16.msra.mxu1 %v1589_v49  ;;  %1560 = vmatprep.subr.bf16.mxu0 %v1559_v50  ;;  %v1641_v49 = vpack.c.bf16 %v260_v43, %v259_v41  ;;  %v1611_v50 = vpack.c.bf16 %v246_v45, %v245_v44  ;;  %v280_v59 = vld [vmem:[#allocation4 + $0x5c8] sm:$0xff]  ;;  %v231_v63 = vld [vmem:[#allocation4 + $0x440] sm:$0xff]  ;;  %v249_v4 = vld [vmem:[#allocation4 + $0x4d0] sm:$0xff] }
  0x83   :  { %1592 = vmatprep.subr.bf16.mxu1 %v1591_v54  ;;  %v1643_v54 = vpack.c.bf16 %v278_v47, %v277_v46  ;;  %v232_v0 = vld [vmem:[#allocation4 + $0x448] sm:$0xff]  ;;  %v263_v1 = vld [vmem:[#allocation4 + $0x540] sm:$0xff]  ;;  %v250_v5 = vld [vmem:[#allocation4 + $0x4d8] sm:$0xff] }
  0x84   :  { %v264_v3 = vld [vmem:[#allocation4 + $0x548] sm:$0xff]  ;;  %v281_v6 = vld [vmem:[#allocation4 + $0x5d0] sm:$0xff]  ;;  %v282_v7 = vld [vmem:[#allocation4 + $0x5d8] sm:$0xff] }
  0x85   :  { %1562 = vmatpush3.bf16.msra.mxu0 %v1561_v60  ;;  %v1613_v60 = vpack.c.bf16 %v230_v52, %v229_v51  ;;  %v233_v11 = vld [vmem:[#allocation4 + $0x450] sm:$0xff]  ;;  %v234_v12 = vld [vmem:[#allocation4 + $0x458] sm:$0xff]  ;;  %v251_v16 = vld [vmem:[#allocation4 + $0x4e0] sm:$0xff] }
  0x86   :  { %1594 = vmatpush3.bf16.msra.mxu1 %v1593_v61  ;;  %1564 = vmatprep.subr.bf16.mxu0 %v1563_v62  ;;  %v1645_v61 = vpack.c.bf16 %v262_v55, %v261_v53  ;;  %v1615_v62 = vpack.c.bf16 %v248_v57, %v247_v56  ;;  %v265_v13 = vld [vmem:[#allocation4 + $0x550] sm:$0xff]  ;;  %v266_v15 = vld [vmem:[#allocation4 + $0x558] sm:$0xff]  ;;  %v252_v17 = vld [vmem:[#allocation4 + $0x4e8] sm:$0xff] }
  0x87   :  { %1596 = vmatprep.subr.bf16.mxu1 %v1595_v2  ;;  %v1647_v2 = vpack.c.bf16 %v280_v59, %v279_v58  ;;  %v283_v18 = vld [vmem:[#allocation4 + $0x5e0] sm:$0xff]  ;;  %v284_v19 = vld [vmem:[#allocation4 + $0x5e8] sm:$0xff]  ;;  %v254_v29 = vld [vmem:[#allocation4 + $0x4f8] sm:$0xff]  ;;  %v1891_v59 = vmov 0.0|0.0  }
  0x88   :  { %v267_v25 = vld [vmem:[#allocation4 + $0x560] sm:$0xff]  ;;  %v1655_v26 = vpack.c.bf16 %v284_v19, %v283_v18  ;;  %v268_v27 = vld [vmem:[#allocation4 + $0x568] sm:$0xff]  ;;  %v285_v30 = vld [vmem:[#allocation4 + $0x5f0] sm:$0xff] }
  0x89   :  { %1566 = vmatpush3.bf16.msra.mxu0 %v1565_v8  ;;  %v1617_v8 = vpack.c.bf16 %v232_v0, %v231_v63  ;;  %v286_v31 = vld [vmem:[#allocation4 + $0x5f8] sm:$0xff]  ;;  %v1657_v33 = vpack.c.bf16 %v268_v27, %v267_v25  ;;  %v303_v40 = vld [vmem:[#allocation4 + $0x680] sm:$0xff]  ;;  %v304_v41 = vld [vmem:[#allocation4 + $0x688] sm:$0xff] }
  0x8a   :  { %1598 = vmatpush3.bf16.msra.mxu1 %v1597_v9  ;;  %1600 = vmatprep.subr.bf16.mxu0 %v1599_v10  ;;  %v1649_v9 = vpack.c.bf16 %v264_v3, %v263_v1  ;;  %v1619_v10 = vpack.c.bf16 %v250_v5, %v249_v4  ;;  %v270_v39 = vld [vmem:[#allocation4 + $0x578] sm:$0xff]  ;;  %v1663_v44 = vpack.c.bf16 %v304_v41, %v303_v40  ;;  %v287_v45 = vld [vmem:[#allocation4 + $0x600] sm:$0xff]  ;;  %v288_v46 = vld [vmem:[#allocation4 + $0x608] sm:$0xff] }
  0x8b   :  { %1632 = vmatprep.subr.bf16.mxu1 %v1631_v14  ;;  %v1651_v14 = vpack.c.bf16 %v282_v7, %v281_v6  ;;  %v319_v47 = vld [vmem:[#allocation4 + $0x700] sm:$0xff]  ;;  %v89_v52 = vld [vmem:[#allocation2 + $0x50] sm:$0xff]  ;;  %v1665_v53 = vpack.c.bf16 %v288_v46, %v287_v45  ;;  %v290_v57 = vld [vmem:[#allocation4 + $0x618] sm:$0xff] }
  0x8c   :  { %566 = vmatmul.mubr.f32.vlgmr.msra.gmra.mrb[2].mxu0 %v83_v20  ;;  %v1621_v20 = vpack.c.bf16 %v234_v12, %v233_v11  ;;  %v87_v51 = vld [vmem:[#allocation2 + $0x40] sm:$0xff]  ;;  %v289_v56 = vld [vmem:[#allocation4 + $0x610] sm:$0xff]  ;;  %v92_v63 = vld [vmem:[#allocation2 + $0x68] sm:$0xff] }
  0x8d   :  { %636 = vmatmul.mubr.f32.vlgmr.msra.gmra.mrb[2].mxu1 %v85_v21  ;;  %1602 = vmatpush3.bf16.msra.mxu0 %v1601_v22  ;;  %v1653_v21 = vpack.c.bf16 %v266_v15, %v265_v13  ;;  %v1623_v22 = vpack.c.bf16 %v252_v17, %v251_v16  ;;  %v321_v58 = vld [vmem:[#allocation4 + $0x710] sm:$0xff]  ;;  %v1669_v0 = vpack.c.bf16 %v290_v57, %v289_v56  ;;  %v94_v1 = vld [vmem:[#allocation2 + $0x78] sm:$0xff]  ;;  %v291_v4 = vld [vmem:[#allocation4 + $0x620] sm:$0xff] }
  0x8e   :  { %1634 = vmatpush3.bf16.msra.mxu1 %v1633_v23  ;;  %1604 = vmatprep.subr.bf16.mxu0 %v1603_v24  ;;  %v235_v23 = vld [vmem:[#allocation4 + $0x460] sm:$0xff]  ;;  %v236_v24 = vld [vmem:[#allocation4 + $0x468] sm:$0xff]  ;;  %v293_v13 = vld [vmem:[#allocation4 + $0x630] sm:$0xff] }
  0x8f   :  { %1636 = vmatprep.subr.bf16.mxu1 %v1635_v28  ;;  %705 = vmatprep.mubr.f32.mxu0 %v88_v34  ;;  %v253_v28 = vld [vmem:[#allocation4 + $0x4f0] sm:$0xff]  ;;  %v1625_v32 = vpack.c.bf16 %v236_v24, %v235_v23  ;;  %v292_v5 = vld [vmem:[#allocation4 + $0x628] sm:$0xff]  ;;  %v323_v6 = vld [vmem:[#allocation4 + $0x720] sm:$0xff] }
  0x90   :  { %775 = vmatprep.mubr.f32.mxu1 %v90_v36  ;;  %v1627_v34 = vpack.c.bf16 %v254_v29, %v253_v28  ;;  %v238_v36 = vld [vmem:[#allocation4 + $0x478] sm:$0xff]  ;;  %v324_v7 = vld [vmem:[#allocation4 + $0x728] sm:$0xff]  ;;  %v325_v15 = vld [vmem:[#allocation4 + $0x730] sm:$0xff] }
  0x91   :  { %1606 = vmatpush3.bf16.msra.mxu0 %v1605_v35  ;;  %v237_v35 = vld [vmem:[#allocation4 + $0x470] sm:$0xff]  ;;  %v1702_v11 = vpack.c.bf16 %v324_v7, %v323_v6  ;;  %v326_v16 = vld [vmem:[#allocation4 + $0x738] sm:$0xff]  ;;  %v311_v17 = vld [vmem:[#allocation4 + $0x6c0] sm:$0xff] }
  0x92   :  { %1638 = vmatpush3.bf16.msra.mxu1 %v1637_v37  ;;  %1608 = vmatprep.subr.bf16.mxu0 %v1607_v38  ;;  %v269_v37 = vld [vmem:[#allocation4 + $0x570] sm:$0xff]  ;;  %v1659_v38 = vpack.c.bf16 %v286_v31, %v285_v30  ;;  %v312_v18 = vld [vmem:[#allocation4 + $0x6c8] sm:$0xff]  ;;  %v327_v24 = vld [vmem:[#allocation4 + $0x740] sm:$0xff] }
  0x93   :  { %1640 = vmatprep.subr.bf16.mxu1 %v1639_v42  ;;  %v1629_v42 = vpack.c.bf16 %v238_v36, %v237_v35  ;;  %v1661_v43 = vpack.c.bf16 %v270_v39, %v269_v37  ;;  %v296_v23 = vld [vmem:[#allocation4 + $0x648] sm:$0xff]  ;;  %v314_v27 = vld [vmem:[#allocation4 + $0x6d8] sm:$0xff]  ;;  %v297_v31 = vld [vmem:[#allocation4 + $0x650] sm:$0xff] }
  0x94   :  { %v328_v25 = vld [vmem:[#allocation4 + $0x748] sm:$0xff]  ;;  %v315_v35 = vld [vmem:[#allocation4 + $0x6e0] sm:$0xff]  ;;  %v318_v45 = vld [vmem:[#allocation4 + $0x6f8] sm:$0xff] }
  0x95   :  { %1610 = vmatpush3.bf16.msra.mxu0 %v1609_v48  ;;  %v320_v48 = vld [vmem:[#allocation4 + $0x708] sm:$0xff]  ;;  %v1708_v29 = vpack.c.bf16 %v328_v25, %v327_v24  ;;  %v299_v40 = vld [vmem:[#allocation4 + $0x660] sm:$0xff] }
  0x96   :  { %1642 = vmatpush3.bf16.msra.mxu1 %v1641_v49  ;;  %1612 = vmatprep.subr.bf16.mxu0 %v1611_v50  ;;  %v305_v49 = vld [vmem:[#allocation4 + $0x690] sm:$0xff]  ;;  %v306_v50 = vld [vmem:[#allocation4 + $0x698] sm:$0xff]  ;;  %v316_v36 = vld [vmem:[#allocation4 + $0x6e8] sm:$0xff] }
  0x97   :  { %1644 = vmatprep.subr.bf16.mxu1 %v1643_v54  ;;  %v1696_v54 = vpack.c.bf16 %v320_v48, %v319_v47  ;;  %v1667_v55 = vpack.c.bf16 %v306_v50, %v305_v49  ;;  %v1687_v39 = vpack.c.bf16 %v316_v36, %v315_v35  ;;  %v300_v41 = vld [vmem:[#allocation4 + $0x668] sm:$0xff]  ;;  %v301_v49 = vld [vmem:[#allocation4 + $0x670] sm:$0xff]  ;;  %v302_v50 = vld [vmem:[#allocation4 + $0x678] sm:$0xff] }
  0x98   :  { %v1689_v46 = vpack.c.bf16 %v300_v41, %v299_v40  ;;  %v336_v56 = vld [vmem:[#allocation4 + $0x788] sm:$0xff]  ;;  %v91_v57 = vld [vmem:[#allocation2 + $0x60] sm:$0xff]  ;;  %v1016_v35 = vld [vmem:[#allocation7] sm:$0xff] }
  0x99   :  { %1614 = vmatpush3.bf16.msra.mxu0 %v1613_v60  ;;  %v322_v60 = vld [vmem:[#allocation4 + $0x718] sm:$0xff]  ;;  %v344_v6 = vld [vmem:[#allocation4 + $0x7c8] sm:$0xff]  ;;  %v931_v24 = vld [vmem:[#allocation6 + $0x48] sm:$0xff] }
  0x9a   :  { %1646 = vmatpush3.bf16.msra.mxu1 %v1645_v61  ;;  %1616 = vmatprep.subr.bf16.mxu0 %v1615_v62  ;;  %v307_v61 = vld [vmem:[#allocation4 + $0x6a0] sm:$0xff]  ;;  %v308_v62 = vld [vmem:[#allocation4 + $0x6a8] sm:$0xff] }
  0x9b   :  { %1648 = vmatprep.subr.bf16.mxu1 %v1647_v2  ;;  %v1699_v2 = vpack.c.bf16 %v322_v60, %v321_v58  ;;  %v1671_v3 = vpack.c.bf16 %v308_v62, %v307_v61  ;;  %v337_v60 = vld [vmem:[#allocation4 + $0x790] sm:$0xff]  ;;  %v338_v61 = vld [vmem:[#allocation4 + $0x798] sm:$0xff]  ;;  %v1017_v36 = vld [vmem:[#allocation7 + $0x8] sm:$0xff] }
  0x9c   :  { %v1723_v62 = vpack.c.bf16 %v338_v61, %v337_v60  ;;  %v1026_v60 = vld [vmem:[#allocation7 + $0x50] sm:$0xff]  ;;  %v1027_v61 = vld [vmem:[#allocation7 + $0x58] sm:$0xff] }
  0x9d   :  { %1618 = vmatpush3.bf16.msra.mxu0 %v1617_v8  ;;  %v309_v8 = vld [vmem:[#allocation4 + $0x6b0] sm:$0xff] }
  0x9e   :  { %1650 = vmatpush3.bf16.msra.mxu1 %v1649_v9  ;;  %1620 = vmatprep.subr.bf16.mxu0 %v1619_v10  ;;  %v310_v9 = vld [vmem:[#allocation4 + $0x6b8] sm:$0xff]  ;;  %v1673_v10 = vpack.c.bf16 %v292_v5, %v291_v4  ;;  %v343_v5 = vld [vmem:[#allocation4 + $0x7c0] sm:$0xff] }
  0x9f   :  { %1652 = vmatprep.subr.bf16.mxu1 %v1651_v14  ;;  %v1675_v12 = vpack.c.bf16 %v310_v9, %v309_v8  ;;  %v294_v14 = vld [vmem:[#allocation4 + $0x638] sm:$0xff]  ;;  %v1732_v7 = vpack.c.bf16 %v344_v6, %v343_v5  ;;  %v1892_v8 = vmov 0.0   ;;  %v345_v9 = vld [vmem:[#allocation4 + $0x7d0] sm:$0x1f] }
  0xa0   :  { %v1677_v19 = vpack.c.bf16 %v294_v14, %v293_v13  ;;  %v924_v14 = vld [vmem:[#allocation6 + $0x10] sm:$0xff] }
  0xa1   :  { %1622 = vmatpush3.bf16.msra.mxu0 %v1621_v20  ;;  %v1705_v20 = vpack.c.bf16 %v326_v16, %v325_v15  ;;  %v925_v15 = vld [vmem:[#allocation6 + $0x18] sm:$0xff] }
  0xa2   :  { %1654 = vmatpush3.bf16.msra.mxu1 %v1653_v21  ;;  %1624 = vmatprep.subr.bf16.mxu0 %v1623_v22  ;;  %v1679_v21 = vpack.c.bf16 %v312_v18, %v311_v17  ;;  %v295_v22 = vld [vmem:[#allocation4 + $0x640] sm:$0xff]  ;;  %v1738_v16 = vpack.c.bf16 %v925_v15, %v924_v14  ;;  %v926_v17 = vld [vmem:[#allocation6 + $0x20] sm:$0xff] }
  0xa3   :  { %1656 = vmatprep.subr.bf16.mxu1 %v1655_v26  ;;  %v313_v26 = vld [vmem:[#allocation4 + $0x6d0] sm:$0xff]  ;;  %v1681_v28 = vpack.c.bf16 %v296_v23, %v295_v22  ;;  %v927_v18 = vld [vmem:[#allocation6 + $0x28] sm:$0xff]  ;;  %v930_v23 = vld [vmem:[#allocation6 + $0x40] sm:$0xff] }
  0xa4   :  { %v1683_v30 = vpack.c.bf16 %v314_v27, %v313_v26  ;;  %v1747_v25 = vpack.c.bf16 %v931_v24, %v930_v23  ;;  %v932_v26 = vld [vmem:[#allocation6 + $0x50] sm:$0xff]  ;;  %v933_v27 = vld [vmem:[#allocation6 + $0x58] sm:$0xff] }
  0xa5   :  { %1626 = vmatpush3.bf16.msra.mxu0 %v1625_v32  ;;  %v298_v32 = vld [vmem:[#allocation4 + $0x658] sm:$0xff] }
  0xa6   :  { %1658 = vmatpush3.bf16.msra.mxu1 %v1657_v33  ;;  %1628 = vmatprep.subr.bf16.mxu0 %v1627_v34  ;;  %v329_v33 = vld [vmem:[#allocation4 + $0x750] sm:$0xff]  ;;  %v330_v34 = vld [vmem:[#allocation4 + $0x758] sm:$0xff]  ;;  %v1685_v37 = vpack.c.bf16 %v298_v32, %v297_v31  ;;  %v936_v32 = vld [vmem:[#allocation6 + $0x70] sm:$0xff] }
  0xa7   :  { %1660 = vmatprep.subr.bf16.mxu1 %v1659_v38  ;;  %v1711_v38 = vpack.c.bf16 %v330_v34, %v329_v33  ;;  %v937_v33 = vld [vmem:[#allocation6 + $0x78] sm:$0xff] }
  0xa8   :  { %v1756_v34 = vpack.c.bf16 %v937_v33, %v936_v32  ;;  %v1121_v33 = vld [vmem:[%s2038_s6] ss:$0 sm:$0xff] }
  0xa9   :  { %1630 = vmatpush3.bf16.msra.mxu0 %v1629_v42  ;;  %v331_v42 = vld [vmem:[#allocation4 + $0x760] sm:$0xff] }
  0xaa   :  { %1662 = vmatpush3.bf16.msra.mxu1 %v1661_v43  ;;  %1664 = vmatprep.subr.bf16.mxu0 %v1663_v44  ;;  %v332_v43 = vld [vmem:[#allocation4 + $0x768] sm:$0xff]  ;;  %v317_v44 = vld [vmem:[#allocation4 + $0x6f0] sm:$0xff] }
  0xab   :  { %1695 = vmatprep.subr.bf16.mxu1 %v1891_v59  ;;  %v1714_v47 = vpack.c.bf16 %v332_v43, %v331_v42  ;;  %v1691_v48 = vpack.c.bf16 %v318_v45, %v317_v44  ;;  %v1020_v42 = vld [vmem:[#allocation7 + $0x20] sm:$0xff]  ;;  %v1021_v43 = vld [vmem:[#allocation7 + $0x28] sm:$0xff] }
  0xac   :  { %706 = vmatmul.mubr.f32.vlgmr.msra.gmra.mrb[4].mxu0 %v87_v51  ;;  %v333_v51 = vld [vmem:[#allocation4 + $0x770] sm:$0xff]  ;;  %v1117_v45 = vld [vmem:[%s2034_s2] ss:$0 sm:$0xff] }
  0xad   :  { %776 = vmatmul.mubr.f32.vlgmr.msra.gmra.mrb[4].mxu1 %v89_v52  ;;  %1666 = vmatpush3.bf16.msra.mxu0 %v1665_v53  ;;  %v334_v52 = vld [vmem:[#allocation4 + $0x778] sm:$0xff]  ;;  %v1693_v53 = vpack.c.bf16 %v302_v50, %v301_v49  ;;  %v1765_v50 = vpack.c.bf16 %v1021_v43, %v1020_v42 }
  0xae   :  { %1697 = vmatpush1.bf16.msra.mxu1 %v1696_v54  ;;  %1668 = vmatprep.subr.bf16.mxu0 %v1667_v55  ;;  %v1717_v54 = vpack.c.bf16 %v334_v52, %v333_v51  ;;  %v335_v55 = vld [vmem:[#allocation4 + $0x780] sm:$0xff]  ;;  %v1022_v52 = vld [vmem:[#allocation7 + $0x30] sm:$0xff] }
  0xaf   :  { %1698 = vmatprep.subr.bf16.mxu1 %v1891_v59  ;;  %845 = vmatprep.mubr.f32.mxu0 %v92_v63  ;;  %v1720_v58 = vpack.c.bf16 %v336_v56, %v335_v55  ;;  %v339_v63 = vld [vmem:[#allocation4 + $0x7a0] sm:$0xff]  ;;  %v1024_v56 = vld [vmem:[#allocation7 + $0x40] sm:$0xff] }
  0xb0   :  { %1119 = vmatprep.mubr.msk.f32.mxu1 %vm353_vm0, %v94_v1 }
  0xb1   :  { %1670 = vmatpush3.bf16.msra.mxu0 %v1669_v0  ;;  %v340_v0 = vld [vmem:[#allocation4 + $0x7a8] sm:$0xff] }
  0xb2   :  { %1700 = vmatpush1.bf16.msra.mxu1 %v1699_v2  ;;  %1672 = vmatprep.subr.bf16.mxu0 %v1671_v3  ;;  %v1726_v1 = vpack.c.bf16 %v340_v0, %v339_v63  ;;  %v341_v2 = vld [vmem:[#allocation4 + $0x7b0] sm:$0xff]  ;;  %v342_v3 = vld [vmem:[#allocation4 + $0x7b8] sm:$0xff]  ;;  %v1029_v0 = vld [vmem:[#allocation7 + $0x68] sm:$0xff] }
  0xb3   :  { %1701 = vmatprep.subr.bf16.mxu1 %v1891_v59  ;;  %v1729_v4 = vpack.c.bf16 %v342_v3, %v341_v2  ;;  %v1028_v63 = vld [vmem:[#allocation7 + $0x60] sm:$0xff] }
  0xb5   :  { %1674 = vmatpush3.bf16.msra.mxu0 %v1673_v10  ;;  %v93_v10 = vld [vmem:[#allocation2 + $0x70] sm:$0xff] }
  0xb6   :  { %1703 = vmatpush1.bf16.msra.mxu1 %v1702_v11  ;;  %1676 = vmatprep.subr.bf16.mxu0 %v1675_v12  ;;  %v922_v11 = vld [vmem:[#allocation6] sm:$0xff]  ;;  %v923_v12 = vld [vmem:[#allocation6 + $0x8] sm:$0xff] }
  0xb7   :  { %1704 = vmatprep.subr.bf16.mxu1 %v1891_v59  ;;  %v1735_v13 = vpack.c.bf16 %v923_v12, %v922_v11 }
  0xb9   :  { %1678 = vmatpush3.bf16.msra.mxu0 %v1677_v19  ;;  %v928_v19 = vld [vmem:[#allocation6 + $0x30] sm:$0xff] }
  0xba   :  { %1706 = vmatpush1.bf16.msra.mxu1 %v1705_v20  ;;  %1680 = vmatprep.subr.bf16.mxu0 %v1679_v21  ;;  %v1741_v20 = vpack.c.bf16 %v927_v18, %v926_v17  ;;  %v929_v21 = vld [vmem:[#allocation6 + $0x38] sm:$0xff] }
  0xbb   :  { %1707 = vmatprep.subr.bf16.mxu1 %v1891_v59  ;;  %v1744_v22 = vpack.c.bf16 %v929_v21, %v928_v19 }
  0xbd   :  { %1682 = vmatpush3.bf16.msra.mxu0 %v1681_v28  ;;  %v1750_v28 = vpack.c.bf16 %v933_v27, %v932_v26  ;;  %v1031_v26 = vld [vmem:[#allocation7 + $0x78] sm:$0xff] }
  0xbe   :  { %1709 = vmatpush1.bf16.msra.mxu1 %v1708_v29  ;;  %1684 = vmatprep.subr.bf16.mxu0 %v1683_v30  ;;  %v934_v29 = vld [vmem:[#allocation6 + $0x60] sm:$0xff]  ;;  %v935_v30 = vld [vmem:[#allocation6 + $0x68] sm:$0xff] }
  0xbf   :  { %1710 = vmatprep.subr.bf16.mxu1 %v1891_v59  ;;  %v1753_v31 = vpack.c.bf16 %v935_v30, %v934_v29 }
  0xc1   :  { %1686 = vmatpush3.bf16.msra.mxu0 %v1685_v37  ;;  %v1018_v37 = vld [vmem:[#allocation7 + $0x10] sm:$0xff] }
  0xc2   :  { %1712 = vmatpush1.bf16.msra.mxu1 %v1711_v38  ;;  %1688 = vmatprep.subr.bf16.mxu0 %v1687_v39  ;;  %v1759_v38 = vpack.c.bf16 %v1017_v36, %v1016_v35  ;;  %v1019_v39 = vld [vmem:[#allocation7 + $0x18] sm:$0xff] }
  0xc3   :  { %1713 = vmatprep.subr.bf16.mxu1 %v1891_v59  ;;  %v1762_v40 = vpack.c.bf16 %v1019_v39, %v1018_v37 }
  0xc5   :  { %1690 = vmatpush3.bf16.msra.mxu0 %v1689_v46 }
  0xc6   :  { %1715 = vmatpush1.bf16.msra.mxu1 %v1714_v47  ;;  %1692 = vmatprep.subr.bf16.mxu0 %v1691_v48 }
  0xc7   :  { %1716 = vmatprep.subr.bf16.mxu1 %v1891_v59 }
  0xc9   :  { %1694 = vmatpush3.bf16.msra.mxu0 %v1693_v53  ;;  %v1023_v53 = vld [vmem:[#allocation7 + $0x38] sm:$0xff] }
  0xca   :  { %1718 = vmatpush1.bf16.msra.mxu1 %v1717_v54  ;;  %1734 = vmatprep.subr.bf16.mxu0 %v1891_v59  ;;  %v1768_v55 = vpack.c.bf16 %v1023_v53, %v1022_v52 }
  0xcb   :  { %1719 = vmatprep.subr.bf16.mxu1 %v1891_v59 }
  0xcc   :  { %846 = vmatmul.mubr.f32.vlgmr.msra.gmra.mrb[6].mxu0 %v91_v57  ;;  %v1025_v57 = vld [vmem:[#allocation7 + $0x48] sm:$0xff] }
  0xcd   :  { %1736 = vmatpush3.bf16.msra.mxu0 %v1735_v13  ;;  %1433 = vmatprep.mubr.msk.f32.mxu0 %vm1893_vm2, %v1892_v8 }
  0xce   :  { %1721 = vmatpush1.bf16.msra.mxu1 %v1720_v58  ;;  %1737 = vmatprep.subr.bf16.mxu0 %v1891_v59  ;;  %v1771_v58 = vpack.c.bf16 %v1025_v57, %v1024_v56 }
  0xcf   :  { %1722 = vmatprep.subr.bf16.mxu1 %v1891_v59 }
  0xd1   :  { %1739 = vmatpush3.bf16.msra.mxu0 %v1738_v16 }
  0xd2   :  { %1724 = vmatpush1.bf16.msra.mxu1 %v1723_v62  ;;  %1740 = vmatprep.subr.bf16.mxu0 %v1891_v59  ;;  %v1774_v62 = vpack.c.bf16 %v1027_v61, %v1026_v60 }
  0xd3   :  { %1725 = vmatprep.subr.bf16.mxu1 %v1891_v59 }
  0xd5   :  { %1742 = vmatpush3.bf16.msra.mxu0 %v1741_v20 }
  0xd6   :  { %1727 = vmatpush1.bf16.msra.mxu1 %v1726_v1  ;;  %1743 = vmatprep.subr.bf16.mxu0 %v1891_v59  ;;  %v1777_v1 = vpack.c.bf16 %v1029_v0, %v1028_v63 }
  0xd7   :  { %1728 = vmatprep.subr.bf16.mxu1 %v1891_v59 }
  0xd9   :  { %1745 = vmatpush3.bf16.msra.mxu0 %v1744_v22 }
  0xda   :  { %1730 = vmatpush1.bf16.msra.mxu1 %v1729_v4  ;;  %1746 = vmatprep.subr.bf16.mxu0 %v1891_v59 }
  0xdb   :  { %1731 = vmatprep.subr.bf16.mxu1 %v1891_v59 }
  0xdd   :  { %1748 = vmatpush3.bf16.msra.mxu0 %v1747_v25  ;;  %v1030_v25 = vld [vmem:[#allocation7 + $0x70] sm:$0xff] }
  0xde   :  { %1733 = vmatpush1.bf16.msra.mxu1 %v1732_v7  ;;  %1749 = vmatprep.subr.bf16.mxu0 %v1891_v59  ;;  %v1780_v27 = vpack.c.bf16 %v1031_v26, %v1030_v25 }
  0xdf   :  { %903 = vmatprep.subr.mxu1 %v1892_v8 }
  0xe1   :  { %1751 = vmatpush3.bf16.msra.mxu0 %v1750_v28  ;;  %v1120_v28 = vld [vmem:[%s2036_s4] ss:$0 sm:$0xff] }
  0xe2   :  { %1118 = vmatpush1.msk.msra.mxu1 %vm357_vm1, %v345_v9  ;;  %1752 = vmatprep.subr.bf16.mxu0 %v1891_v59 }
  0xe3   :  { %916 = vmatmul.mubr.f32.vlgmr.msra.gmra.mrb[6].mxu1 %v93_v10  ;;  %1758 = vmatprep.subr.bf16.mxu1 %v1891_v59 }
  0xe4   :  { %1468 = vmatprep.mubr.msk.f32.mxu1 %vm1893_vm2, %v1892_v8  ;;  %1760 = vmatpush3.bf16.msra.mxu1 %v1759_v38 }
  0xe5   :  { %1754 = vmatpush3.bf16.msra.mxu0 %v1753_v31  ;;  %1761 = vmatprep.subr.bf16.mxu1 %v1891_v59 }
  0xe6   :  { %1755 = vmatprep.subr.bf16.mxu0 %v1891_v59 }
  0xe8   :  { %1763 = vmatpush3.bf16.msra.mxu1 %v1762_v40 }
  0xe9   :  { %1757 = vmatpush3.bf16.msra.mxu0 %v1756_v34  ;;  %1764 = vmatprep.subr.bf16.mxu1 %v1891_v59 }
  0xec   :  { %1766 = vmatpush3.bf16.msra.mxu1 %v1765_v50 }
  0xed   :  { %1767 = vmatprep.subr.bf16.mxu1 %v1891_v59 }
  0xf0   :  { %1769 = vmatpush3.bf16.msra.mxu1 %v1768_v55 }
  0xf1   :  { %1770 = vmatprep.subr.bf16.mxu1 %v1891_v59 }
  0xf4   :  { %1772 = vmatpush3.bf16.msra.mxu1 %v1771_v58 }
  0xf5   :  { %1773 = vmatprep.subr.bf16.mxu1 %v1891_v59 }
  0xf8   :  { %1775 = vmatpush3.bf16.msra.mxu1 %v1774_v62 }
  0xf9   :  { %1776 = vmatprep.subr.bf16.mxu1 %v1891_v59 }
  0xfc   :  { %1778 = vmatpush3.bf16.msra.mxu1 %v1777_v1 }
  0xfd   :  { %1779 = vmatprep.subr.bf16.mxu1 %v1891_v59 }
 0x100   :  { %1781 = vmatpush3.bf16.msra.mxu1 %v1780_v27 }
 0x13f   :  { %v1154_v41 = vpop.f32.mrb[0].mxu0 }
 0x140   :  { %v1189_v44 = vpop.f32.mrb[0].mxu1  ;;  %v1155_v46 = vpop.f32.mrb[1].mxu0 }
 0x141   :  { %v1156_v47 = vadd.f32 %v1155_v46, %v1154_v41  ;;  %v1190_v48 = vpop.f32.mrb[1].mxu1 }
 0x142   :  { %v1191_v49 = vadd.f32 %v1190_v48, %v1189_v44 }
 0x143   :  { %v428_v51 = vadd.f32 %v1156_v47, %v1117_v45 }
 0x145   :  { %v498_v54 = vadd.f32 %v1191_v49, %v428_v51 }
 0x15f   :  { %v1224_v2 = vpop.f32.mrb[2].mxu0 }
 0x160   :  { %v1259_v3 = vpop.f32.mrb[2].mxu1  ;;  %v1225_v4 = vpop.f32.mrb[3].mxu0 }
 0x161   :  { %v1226_v5 = vadd.f32 %v1225_v4, %v1224_v2  ;;  %v1260_v6 = vpop.f32.mrb[3].mxu1 }
 0x162   :  { %v1261_v7 = vadd.f32 %v1260_v6, %v1259_v3 }
 0x163   :  { %v568_v8 = vadd.f32 %v1226_v5, %v498_v54 }
 0x165   :  { %v638_v9 = vadd.f32 %v1261_v7, %v568_v8 }
 0x17f   :  { %v1294_v10 = vpop.f32.mrb[4].mxu0 }
 0x180   :  { %v1329_v11 = vpop.f32.mrb[4].mxu1  ;;  %v1295_v12 = vpop.f32.mrb[5].mxu0 }
 0x181   :  { %v1296_v13 = vadd.f32 %v1295_v12, %v1294_v10  ;;  %v1330_v14 = vpop.f32.mrb[5].mxu1 }
 0x182   :  { %v1331_v15 = vadd.f32 %v1330_v14, %v1329_v11 }
 0x183   :  { %v708_v16 = vadd.f32 %v1296_v13, %v638_v9 }
 0x185   :  { %v778_v17 = vadd.f32 %v1331_v15, %v708_v16 }
 0x19f   :  { %v1364_v18 = vpop.f32.mrb[6].mxu0 }
 0x1a0   :  { %v1365_v19 = vpop.f32.mrb[7].mxu0 }
 0x1a1   :  { %v1366_v20 = vadd.f32 %v1365_v19, %v1364_v18 }
 0x1a3   :  { %v848_v59 = vadd.f32 %v1366_v20, %v778_v17 }
 0x1b6   :  { %v917_v21 = vpop.f32.mrb[6].mxu1 }
 0x1b7   :  { %v918_v22 = vadd.f32 %v917_v21, %v848_v59  ;;  %v919_v23 = vpop.f32.mrb[7].mxu1 }
 0x1b9   :  { %v921_v24 = vmax.f32 %v918_v22, 0.0 }
 0x1bb   :  { %1434 = vmatmul.mubr.f32.vlgmr.msra.gmra.mrb[8].mxu0 %v921_v24 }
 0x28e   :  { %v1011_v29 = vpop.f32.mrb[8].mxu0 }
 0x28f   :  { %v1012_v30 = vadd.f32 %v1120_v28, %v1011_v29  ;;  %v1435_v31 = vpop.f32.mrb[9].mxu0 }
 0x291   :  { %v1015_v32 = vmax.f32 %v1012_v30, 0.0 }
 0x293   :  { %1469 = vmatmul.mubr.f32.vlgmr.msra.gmra.mrb[8].mxu1 %v1015_v32 }
 0x366   :  { %v1105_v34 = vpop.f32.mrb[8].mxu1 }
 0x367   :  { %v1106_v35 = vadd.f32 %v1121_v33, %v1105_v34  ;;  %v1470_v36 = vpop.f32.mrb[9].mxu1 }
 0x369   :  { %1109 = vst [vmem:[%s2039_s7] sm:$0xff] %v1106_v35 }
 0x36a   :  { %1114 = vsyncpa [#allocation3], 1 }
 0x36b   :  { %1115 = vsyncpa [#allocation5], 1 }
 0x36c   :  { %1116 = vsyncpa [#allocation8], 1 }

</bundles_post_ra>
